<compile_context>
chip_gen: v7x
topology: tpu7x:2x2x1
jax: 0.10.0
libtpu: 0.0.40
codegen_flags: <defaults>
</compile_context>

<pallas_src>
import functools

import jax
import jax.numpy as jnp
from jax.experimental import pallas as pl
from jax.experimental.pallas import tpu as pltpu

_LANE = 128


def _bce_loss2d_kernel(logits_ref, targets_ref, out_ref, acc_ref, *,
                       hw, tile_rows, inv_n, needs_mask):
    # logits_ref : (2, tile_rows, 128) native-dtype VMEM (one batch, one HW tile,
    #              channels 0..1 only — channel window via BlockSpec)
    # targets_ref: (tile_rows, 128)    native int VMEM (labels in {0,1,2})
    # out_ref    : (8, 128)            f32 VMEM per-batch partial (written once)
    # acc_ref    : (tile_rows, 128)    f32 VMEM running per-batch partial sums
    t = pl.program_id(1)
    last_t = pl.num_programs(1) - 1

    @pl.when(t == 0)
    def _init():
        acc_ref[...] = jnp.zeros_like(acc_ref)

    tgt = targets_ref[...]                                  # native int dtype

    def class_bce(i):
        x = logits_ref[i].astype(jnp.float32)               # (tr, 128)
        z = (tgt == (i + 1)).astype(jnp.float32)
        s = jnp.log(1.0 + jnp.exp(-jnp.abs(x)))
        # relu(x) - x*z + s == softplus(x) if z==0 else softplus(-x)
        # min(.,100) == nn.BCELoss's log clamp at -100
        return jnp.minimum(jnp.maximum(x, 0.0) - x * z + s, 100.0)

    contrib = class_bce(0) + class_bce(1)                   # (tr, 128)

    if needs_mask:
        # Only the last HW tile can contain padded / out-of-bounds positions.
        @pl.when(t != last_t)
        def _acc_full():
            acc_ref[...] += contrib

        @pl.when(t == last_t)
        def _acc_tail():
            r = jax.lax.broadcasted_iota(jnp.int32, contrib.shape, 0)
            lane = jax.lax.broadcasted_iota(jnp.int32, contrib.shape, 1)
            hw_idx = (t * tile_rows + r) * _LANE + lane
            acc_ref[...] += jnp.where(hw_idx < hw, contrib, 0.0)
    else:
        acc_ref[...] += contrib

    @pl.when(t == last_t)
    def _finalize():
        # per-batch partial of the final mean: sum / (N*H*W)
        partial = jnp.sum(acc_ref[...]) * inv_n
        out_ref[...] = jnp.full((8, _LANE), partial, dtype=jnp.float32)


def bce_loss2d(logits, targets, *, tile_rows=2048):
    """JAX/Pallas equivalent of BCELoss2d().forward(logits, targets)."""
    N, C, H, W = logits.shape
    assert C >= 2, "BCELoss2d uses channels 0 and 1 of the logits"
    HW = H * W
    HWp = pl.cdiv(HW, _LANE) * _LANE
    R = HWp // _LANE

    # Free reshapes only: NCHW stays channel-major, no dtype-cast pre-pass.
    lg = logits.reshape(N, C, HW)
    tg = targets.reshape(N, HW)
    if HWp != HW:  # rare: spatial size not a multiple of 128 (masked in-kernel)
        lg = jnp.pad(lg, ((0, 0), (0, 0), (0, HWp - HW)))
        tg = jnp.pad(tg, ((0, 0), (0, HWp - HW)))
    lg = lg.reshape(N, C, R, _LANE)
    tg = tg.reshape(N, R, _LANE)

    tr = min(tile_rows, R)
    if tr < R:
        tr = max(16, (tr // 16) * 16)     # sublane-aligned (f32 & bf16 safe)
    num_tiles = pl.cdiv(R, tr)
    needs_mask = (HWp != HW) or (R % tr != 0)

    kernel = functools.partial(
        _bce_loss2d_kernel, hw=HW, tile_rows=tr,
        inv_n=1.0 / (N * HW), needs_mask=needs_mask)

    per_batch = pl.pallas_call(
        kernel,
        out_shape=jax.ShapeDtypeStruct((N, 8, _LANE), jnp.float32),
        grid=(N, num_tiles),
        in_specs=[
            # channel window: only channels 0..1 are ever DMA'd
            pl.BlockSpec((None, 2, tr, _LANE), lambda n, t: (n, 0, t, 0)),
            pl.BlockSpec((None, tr, _LANE), lambda n, t: (n, t, 0)),
        ],
        out_specs=pl.BlockSpec((None, 8, _LANE), lambda n, t: (n, 0, 0)),
        scratch_shapes=[pltpu.VMEM((tr, _LANE), jnp.float32)],
        compiler_params=pltpu.CompilerParams(
            dimension_semantics=("parallel", "arbitrary"),
            vmem_limit_bytes=32 * 1024 * 1024),
    )(lg, tg)

    # sum the N per-batch partials (tiny XLA reduce)
    return jnp.sum(per_batch[:, 0, 0])


def _reference(logits, targets):
    """Pure-JAX reference mirroring the PyTorch module."""
    probs = jax.nn.sigmoid(logits)
    loss = 0.0
    for i in range(2):
        p = probs[:, i].reshape(-1)
        t = (targets == (i + 1)).astype(jnp.float32).reshape(-1)
        log_p = jnp.maximum(jnp.log(p), -100.0)
        log_1mp = jnp.maximum(jnp.log(1.0 - p), -100.0)
        loss = loss + jnp.mean(-(t * log_p + (1.0 - t) * log_1mp))
    return loss


if __name__ == "__main__":
    key = jax.random.PRNGKey(0)
    k1, k2 = jax.random.split(key)
    # small shapes consistent with the module: batch=2, channels=4, spatial=16
    logits = jax.random.normal(k1, (2, 4, 16, 16), dtype=jnp.float32)
    targets = jax.random.randint(k2, (2, 16, 16), 0, 3).astype(jnp.int32)

    loss = bce_loss2d(logits, targets)
    jax.block_until_ready(loss)

    ref = _reference(logits, targets)
    assert jnp.allclose(loss, ref, rtol=1e-5, atol=1e-5), (loss, ref)
    print("KERNEL_OK")
</pallas_src>

<mosaic_0001>
module attributes {stable_mosaic.version = 11 : i64} {
  func.func @_bce_loss2d_kernel(%arg0: i32, %arg1: i32, %arg2: memref<1x2x2x128xf32, #tpu.memory_space<vmem>>, %arg3: memref<1x2x128xi32, #tpu.memory_space<vmem>>, %arg4: memref<1x8x128xf32, #tpu.memory_space<vmem>>, %arg5: memref<2x128xf32, #tpu.memory_space<vmem>>) attributes {dimension_semantics = [#tpu.dimension_semantics<parallel>, #tpu.dimension_semantics<arbitrary>], iteration_bounds = array<i64: 2, 1>, scalar_prefetch = 0 : i64, scratch_operands = 1 : i64, tpu.core_type = #tpu.core_type<tc>, window_params = [{transform_indices = @transform_0, window_bounds = array<i64: 1, 2, 2, 128>}, {transform_indices = @transform_1, window_bounds = array<i64: 1, 2, 128>}, {transform_indices = @transform_2, window_bounds = array<i64: 1, 8, 128>}]} {
    %c0_i32 = arith.constant 0 : i32
    %0 = arith.cmpi eq, %arg1, %c0_i32 : i32
    %1 = arith.extui %0 : i1 to i32
    %c0_i32_0 = arith.constant 0 : i32
    %2 = arith.cmpi ne, %1, %c0_i32_0 : i32
    scf.if %2 {
      %cst_23 = arith.constant 0.000000e+00 : f32
      %52 = vector.broadcast %cst_23 : f32 to vector<2x128xf32>
      %c0_24 = arith.constant 0 : index
      %c0_25 = arith.constant 0 : index
      %53 = vector.load %arg5[%c0_24, %c0_25] : memref<2x128xf32, #tpu.memory_space<vmem>>, vector<2x128xf32>
      tpu.vector_store %arg5[%c0_24, %c0_25], %52 {strides = array<i32>} : memref<2x128xf32, #tpu.memory_space<vmem>>, vector<2x128xf32>,
    } else {
    }
    %c0 = arith.constant 0 : index
    %c0_1 = arith.constant 0 : index
    %c0_2 = arith.constant 0 : index
    %3 = vector.load %arg3[%c0, %c0_1, %c0_2] : memref<1x2x128xi32, #tpu.memory_space<vmem>>, vector<1x2x128xi32>
    %4 = vector.shape_cast %3 : vector<1x2x128xi32> to vector<2x128xi32>
    %c0_3 = arith.constant 0 : index
    %c0_4 = arith.constant 0 : index
    %c0_5 = arith.constant 0 : index
    %c0_6 = arith.constant 0 : index
    %5 = vector.load %arg2[%c0_3, %c0_4, %c0_5, %c0_6] : memref<1x2x2x128xf32, #tpu.memory_space<vmem>>, vector<1x1x2x128xf32>
    %6 = vector.shape_cast %5 : vector<1x1x2x128xf32> to vector<2x128xf32>
    %c1_i32 = arith.constant 1 : i32
    %7 = vector.broadcast %c1_i32 : i32 to vector<2x128xi32>
    %8 = arith.cmpi eq, %4, %7 : vector<2x128xi32>
    %9 = arith.extui %8 : vector<2x128xi1> to vector<2x128xi32>
    %10 = arith.sitofp %9 : vector<2x128xi32> to vector<2x128xf32>
    %11 = math.absf %6 : vector<2x128xf32>
    %cst = arith.constant 0.000000e+00 : f32
    %12 = vector.broadcast %cst : f32 to vector<2x128xf32>
    %13 = arith.subf %12, %11 : vector<2x128xf32>
    %14 = math.exp %13 : vector<2x128xf32>
    %cst_7 = arith.constant 1.000000e+00 : f32
    %15 = vector.broadcast %cst_7 : f32 to vector<2x128xf32>
    %16 = arith.addf %15, %14 : vector<2x128xf32>
    %17 = math.log %16 : vector<2x128xf32>
    %cst_8 = arith.constant 0.000000e+00 : f32
    %18 = vector.broadcast %cst_8 : f32 to vector<2x128xf32>
    %19 = arith.maximumf %6, %18 : vector<2x128xf32>
    %20 = arith.mulf %6, %10 : vector<2x128xf32>
    %21 = arith.subf %19, %20 : vector<2x128xf32>
    %22 = arith.addf %21, %17 : vector<2x128xf32>
    %cst_9 = arith.constant 1.000000e+02 : f32
    %23 = vector.broadcast %cst_9 : f32 to vector<2x128xf32>
    %24 = arith.minimumf %22, %23 : vector<2x128xf32>
    %c0_10 = arith.constant 0 : index
    %c1 = arith.constant 1 : index
    %c0_11 = arith.constant 0 : index
    %c0_12 = arith.constant 0 : index
    %25 = vector.load %arg2[%c0_10, %c1, %c0_11, %c0_12] : memref<1x2x2x128xf32, #tpu.memory_space<vmem>>, vector<1x1x2x128xf32>
    %26 = vector.shape_cast %25 : vector<1x1x2x128xf32> to vector<2x128xf32>
    %c2_i32 = arith.constant 2 : i32
    %27 = vector.broadcast %c2_i32 : i32 to vector<2x128xi32>
    %28 = arith.cmpi eq, %4, %27 : vector<2x128xi32>
    %29 = arith.extui %28 : vector<2x128xi1> to vector<2x128xi32>
    %30 = arith.sitofp %29 : vector<2x128xi32> to vector<2x128xf32>
    %31 = math.absf %26 : vector<2x128xf32>
    %cst_13 = arith.constant 0.000000e+00 : f32
    %32 = vector.broadcast %cst_13 : f32 to vector<2x128xf32>
    %33 = arith.subf %32, %31 : vector<2x128xf32>
    %34 = math.exp %33 : vector<2x128xf32>
    %cst_14 = arith.constant 1.000000e+00 : f32
    %35 = vector.broadcast %cst_14 : f32 to vector<2x128xf32>
    %36 = arith.addf %35, %34 : vector<2x128xf32>
    %37 = math.log %36 : vector<2x128xf32>
    %cst_15 = arith.constant 0.000000e+00 : f32
    %38 = vector.broadcast %cst_15 : f32 to vector<2x128xf32>
    %39 = arith.maximumf %26, %38 : vector<2x128xf32>
    %40 = arith.mulf %26, %30 : vector<2x128xf32>
    %41 = arith.subf %39, %40 : vector<2x128xf32>
    %42 = arith.addf %41, %37 : vector<2x128xf32>
    %cst_16 = arith.constant 1.000000e+02 : f32
    %43 = vector.broadcast %cst_16 : f32 to vector<2x128xf32>
    %44 = arith.minimumf %42, %43 : vector<2x128xf32>
    %45 = arith.addf %24, %44 : vector<2x128xf32>
    %c0_17 = arith.constant 0 : index
    %c0_18 = arith.constant 0 : index
    %46 = vector.load %arg5[%c0_17, %c0_18] : memref<2x128xf32, #tpu.memory_space<vmem>>, vector<2x128xf32>
    %47 = arith.addf %46, %45 : vector<2x128xf32>
    %c0_19 = arith.constant 0 : index
    %c0_20 = arith.constant 0 : index
    %48 = vector.load %arg5[%c0_19, %c0_20] : memref<2x128xf32, #tpu.memory_space<vmem>>, vector<2x128xf32>
    tpu.vector_store %arg5[%c0_19, %c0_20], %47 {strides = array<i32>} : memref<2x128xf32, #tpu.memory_space<vmem>>, vector<2x128xf32>,
    %c0_i32_21 = arith.constant 0 : i32
    %49 = arith.cmpi eq, %arg1, %c0_i32_21 : i32
    %50 = arith.extui %49 : i1 to i32
    %c0_i32_22 = arith.constant 0 : i32
    %51 = arith.cmpi ne, %50, %c0_i32_22 : i32
    scf.if %51 {
      %c0_23 = arith.constant 0 : index
      %c0_24 = arith.constant 0 : index
      %52 = vector.load %arg5[%c0_23, %c0_24] : memref<2x128xf32, #tpu.memory_space<vmem>>, vector<2x128xf32>
      %53 = vector.shape_cast %52 : vector<2x128xf32> to vector<1x2x128xf32>
      %cst_25 = arith.constant dense<0.000000e+00> : vector<1xf32>
      %54 = vector.multi_reduction <add>, %53, %cst_25 [1, 2] : vector<1x2x128xf32> to vector<1xf32>
      %55 = vector.shape_cast %54 : vector<1xf32> to vector<1x1x1xf32>
      %56 = vector.extract %55[0, 0, 0] : f32 from vector<1x1x1xf32>
      %cst_26 = arith.constant 0.001953125 : f32
      %57 = arith.mulf %56, %cst_26 : f32
      %58 = vector.broadcast %57 : f32 to vector<8x128xf32>
      %c0_27 = arith.constant 0 : index
      %c0_28 = arith.constant 0 : index
      %c0_29 = arith.constant 0 : index
      %59 = vector.load %arg4[%c0_27, %c0_28, %c0_29] : memref<1x8x128xf32, #tpu.memory_space<vmem>>, vector<1x8x128xf32>
      %60 = vector.shape_cast %59 : vector<1x8x128xf32> to vector<8x128xf32>
      %61 = vector.shape_cast %58 : vector<8x128xf32> to vector<1x8x128xf32>
      tpu.vector_store %arg4[%c0_27, %c0_28, %c0_29], %61 {strides = array<i32>} : memref<1x8x128xf32, #tpu.memory_space<vmem>>, vector<1x8x128xf32>,
    } else {
    }
    return
  }
  func.func @transform_0(%arg0: i32, %arg1: i32) -> (i32, i32, i32, i32) {
    %c0_i32 = arith.constant 0 : i32
    %c0_i32_0 = arith.constant 0 : i32
    %c0_i32_1 = arith.constant 0 : i32
    return %arg0, %c0_i32, %arg1, %c0_i32_0 : i32, i32, i32, i32
  }
  func.func @transform_1(%arg0: i32, %arg1: i32) -> (i32, i32, i32) {
    %c0_i32 = arith.constant 0 : i32
    %c0_i32_0 = arith.constant 0 : i32
    return %arg0, %arg1, %c0_i32 : i32, i32, i32
  }
  func.func @transform_2(%arg0: i32, %arg1: i32) -> (i32, i32, i32) {
    %c0_i32 = arith.constant 0 : i32
    %c0_i32_0 = arith.constant 0 : i32
    %c0_i32_1 = arith.constant 0 : i32
    return %arg0, %c0_i32, %c0_i32_0 : i32, i32, i32
  }
}

</mosaic_0001>

<bundles_post_ra>
// kernel: tpu_custom_call.1
= control target key start
LH: loop header
LB: loop body
LE: loop exit
PB: predicated region body
PF: predicated region fallthrough
CT: control target
= control target key end

     0   :  { %7 = vsyncpa [#allocation4], 0  ;;  %s882_s0 = inlined_call_operand.hbm [shape: f32[2,4,2,128], index: 0, kind: input, shape index: {}]   ;;  %s883_s1 = inlined_call_operand.hbm [shape: s32[2,2,128], index: 1, kind: input, shape index: {}]   ;;  %s884_s2 = inlined_call_operand.hbm [shape: f32[2,8,128], index: 2, kind: output, shape index: {}]  }
   0x1   :  { %9 = vsyncpa [#allocation4 + $0x1], 0 }
   0x2   :  { %10 = vsyncpa [#allocation7], 0 }
   0x3   :  { %12 = vsyncpa [#allocation7 + $0x1], 0 }
   0x4   :  { %13 = vsyncpa [#allocation5], 0 }
   0x5   :  { %15 = vsyncpa [#allocation5 + $0x1], 0  ;;  %s666_s9 = smov 0   ;;  %s668_s10 = smov 0  }
   0x6   :  { %s670_s11 = smov 0   ;;  %s672_s12 = smov 0  }
   0x7   :  { %s674_s13 = smov 0   ;;  %s676_s14 = smov 0  }
   0x8 LB: > { %s396_s15 = sadd.s32 4294967295, %s643_s14   ;;  %s397_s16 = sadd.s32 4294967294, %s643_s14   ;;  %s643_s14 = sphi %s676_s14, %s21_s14   ;;  %s639_s13 = sphi %s674_s13, %s903_s13   ;;  %s635_s12 = sphi %s672_s12, %s902_s12   ;;  %s631_s11 = sphi %s670_s11, %s901_s11   ;;  %s627_s10 = sphi %s668_s10, %s900_s10   ;;  %s623_s9 = sphi %s666_s9, %s899_s9  }
   0x9   : > { %s33_s17 = sadd.s32 1, %s639_s13  ;;  %s42_s18 = sadd.s32 1, %s631_s11 }
   0xa   : > { %p35_p0 = scmp.ge.s32.totalorder %s33_s17, 2  ;;  %p49_p1 = scmp.ne.s32.totalorder %s631_s11, %s627_s10 }
   0xb   : > { %p50_p2 = scmp.eq.s32.totalorder %s643_s14, 0  ;;  %p55_p3 = scmp.ne.s32.totalorder %s627_s10, %s623_s9 }
   0xc   : > { %s905_s17 = smov (%p35_p0, %s33_s17), 0  ;;  %p56_p5 = scmp.eq.s32.totalorder %s396_s15, 0 }
   0xd   : > { %p707_p4 = por %p50_p2, %p49_p1  ;;  %s37_s20 = ssub.s32 %s639_s13, %s905_s17 }
   0xe   : > { %p107_p6 = scmp.eq.s32.totalorder %s396_s15, 1  ;;  %p40_p7 = scmp.eq.s32.totalorder %s37_s20, 0 }
   0xf   : > { %p713_p8 = por %p56_p5, %p55_p3  ;;  %p113_p10 = scmp.eq.s32.totalorder %s397_s16, 1 }
  0x10   : > { %p717_p9 = por %p107_p6, %p49_p1  ;;  %p436_p13 = scmp.lt.s32.totalorder %s643_s14, 2 }
  0x11   : > { %s888_s21 = scalar_select %p713_p8, 1, 0 }
  0x12   : > { %s889_s22 = scalar_select %p717_p9, 1, 0 }
  0x13   : > { %s722_s23 = scalar_select %p40_p7, %s631_s11, %s42_s18  }
  0x14   : > { %p724_p11 = por %p113_p10, %p55_p3  ;;  %s731_s25 = sand.u32 1, %s631_s11  }
  0x15   : > { %s400_s26 = sshll.u32 %s731_s25, 2  ;;  %s416_s27 = sshll.u32 %s639_s13, 7 }
  0x16   : > { %s890_s24 = scalar_select %p724_p11, 1, 0 }
  0x17   : > { %s738_s30 = scalar_lea.hbm %s882_s0, %s416_s27  ;;  %s137_s3 = scalar_lea.vmem [#allocation3], %s400_s26 }
  0x18   : > { %s145_s4 = sshll.u32 %s137_s3, 4  ;;  %p744_p0 = pnand %p436_p13, %p707_p4  ;;  %s740_s4 = int_to_ptr.vmem [resolvable:$true] %s145_s4 }
  0x19   : > { %s134_s6 = scalar_lea.sflag [#allocation4], %s731_s25  ;;  %s497_s7 = scalar_lea.hbm %s738_s30, 64 }
  0x1a   : > { %p498_p2 = scmp.ne.s32.totalorder %s738_s30, %s497_s7  ;;  %p499_p3 = pneg %p744_p0 }
  0x1b   : > { %s502_s16 = scalar_lea.hbm %s882_s0, 256  ;;  %p503_p4 = scmp.lt.u32.totalorder %s738_s30, %s882_s0 }
  0x1c   : > { %p500_p5 = pnand %p499_p3, %p498_p2  ;;  %p504_p7 = scmp.lt.u32.totalorder %s502_s16, %s497_s7 }
  0x1d   : > { %p506_p13 = scmp.lt.u32.totalorder %s497_s7, %s738_s30 }
  0x1e   : > { %p501_p6 = pneg %p500_p5  ;;  %p505_p10 = por %p504_p7, %p503_p4 }
  0x20   : > { %p507_p12 = por %p506_p13, %p505_p10 }
  0x22   : > { %p508_p1 = pnand %p507_p12, %p501_p6 }
  0x24   : > { %511 = shalt.err (!%p508_p1)
}
  0x25   : > { %s512_s20 = scalar_lea.vmem %s740_s4, 64  ;;  %s645_s26 = smov [#allocation3]  }
  0x26   : > { %p513_p2 = scmp.ne.s32.totalorder %s740_s4, %s512_s20  ;;  %s517_s27 = sshll.u32 %s645_s26, 4  ;;  %s518_s27 = int_to_ptr.vmem [resolvable:$false] %s517_s27 }
  0x27   : > { %s519_s28 = scalar_lea.vmem %s518_s27, 128  ;;  %p520_p9 = scmp.lt.s32.totalorder %s740_s4, %s518_s27 }
  0x28   : > { %p515_p5 = pnand %p513_p2, %p499_p3  ;;  %p521_p4 = scmp.lt.s32.totalorder %s519_s28, %s512_s20 }
  0x2a   : > { %p516_p11 = pneg %p515_p5  ;;  %p522_p7 = por %p521_p4, %p520_p9 }
  0x2c   : > { %p523_p10 = pnand %p522_p7, %p516_p11 }
  0x2e   : > { %526 = shalt.err (!%p523_p10)
}
  0x2f   : > { %s646_s29 = smov 32   ;;  %s647_s3 = smov 2  }
  0x30   : > { %428 = dma.hbm_to_vmem [thread:$0]  (!%p744_p0), %s738_s30, 64, %s740_s4, %s134_s6, %s646_s29, %s646_s29, %s647_s3  }
  0x31   : > { %p172_p12 = scmp.lt.s32.totalorder %s643_s14, 3  ;;  %s403_s7 = sshll.u32 %s731_s25, 1 }
  0x32   : > { %s404_s8 = sshll.u32 %s639_s13, 5  ;;  %p892_p9 = scmp.ge.s32.totalorder %s643_s14, 1 }
  0x33   : > { %s789_s19 = scalar_lea.hbm %s883_s1, %s404_s8  ;;  %s159_s20 = scalar_lea.vmem [#allocation6], %s403_s7 }
  0x34   : > { %p782_p11 = pnand %p892_p9, %p172_p12  ;;  %s167_s26 = sshll.u32 %s159_s20, 4  ;;  %s168_s26 = int_to_ptr.vmem [resolvable:$true] %s167_s26 }
  0x35   : > { %s156_s30 = scalar_lea.sflag [#allocation7], %s731_s25  ;;  %s527_s4 = scalar_lea.hbm %s789_s19, 32 }
  0x36   : > { %s893_s15 = scalar_select %p782_p11, 1, 0 }
  0x37   : > { %p528_p1 = scmp.ne.s32.totalorder %s789_s19, %s527_s4  ;;  %s532_s28 = scalar_lea.hbm %s883_s1, 64 }
  0x38   : > { %p533_p2 = scmp.lt.u32.totalorder %s789_s19, %s883_s1  ;;  %p534_p5 = scmp.lt.u32.totalorder %s532_s28, %s527_s4 }
  0x39   : > { %p530_p6 = pnand %p528_p1, %p499_p3  ;;  %p536_p7 = scmp.lt.u32.totalorder %s527_s4, %s789_s19 }
  0x3a   : > { %p535_p4 = por %p534_p5, %p533_p2 }
  0x3b   : > { %p531_p13 = pneg %p530_p6 }
  0x3c   : > { %p537_p10 = por %p536_p7, %p535_p4 }
  0x3e   : > { %p538_p12 = pnand %p537_p10, %p531_p13 }
  0x40   : > { %541 = shalt.err (!%p538_p12)
}
  0x41   : > { %s542_s25 = scalar_lea.vmem %s168_s26, 32  ;;  %s648_s7 = smov [#allocation6]  }
  0x42   : > { %p543_p9 = scmp.ne.s32.totalorder %s168_s26, %s542_s25  ;;  %s547_s8 = sshll.u32 %s648_s7, 4  ;;  %s548_s8 = int_to_ptr.vmem [resolvable:$false] %s547_s8 }
  0x43   : > { %s549_s16 = scalar_lea.vmem %s548_s8, 64  ;;  %p550_p8 = scmp.lt.s32.totalorder %s168_s26, %s548_s8 }
  0x44   : > { %p545_p1 = pnand %p543_p9, %p499_p3  ;;  %p551_p11 = scmp.lt.s32.totalorder %s549_s16, %s542_s25 }
  0x46   : > { %p546_p6 = pneg %p545_p1  ;;  %p552_p2 = por %p551_p11, %p550_p8 }
  0x48   : > { %p553_p5 = pnand %p552_p2, %p546_p6 }
  0x4a   : > { %556 = shalt.err (!%p553_p5)
}
  0x4b   : > { %431 = dma.hbm_to_vmem [thread:$0]  (!%p744_p0), %s789_s19, 32, %s168_s26, %s156_s30  }
  0x4c   : > { %p894_p13 = scmp.ne.s32.totalorder %s893_s15, 0 }
  0x4d   : > { %s814_s18 = sand.u32 (!%p894_p13), 1, %s627_s10   ;;  %p895_p3 = scmp.ne.s32.totalorder (!%p894_p13), %s888_s21, 0 }
  0x4e   : > { %176 = sbr.rel (%p894_p13) target bundleno = 361 (0x169), region = 28  ;;  %s406_s20 = sshll.u32 (!%p894_p13), %s814_s18, 2 }
  0x4f   : > { %s179_s4 = scalar_lea.sflag (!%p894_p13), [#allocation4], %s814_s18  ;;  %s182_s6 = scalar_lea.vmem (!%p894_p13), [#allocation3], %s406_s20 }
  0x55   : > { %610 = dma.done.wait (%p895_p3), %s179_s4, 64  }
  0x56   : > { %612 = vsyncadd (%p895_p3), %s179_s4, 4294967232  ;;  %s407_s5 = sshll.u32 %s814_s18, 1  ;;  %s188_s15 = scalar_lea.sflag [#allocation7], %s814_s18 }
  0x57   : > { %s191_s19 = scalar_lea.vmem [#allocation6], %s407_s5 }
  0x58   : > { %614 = dma.done.wait (%p895_p3), %s188_s15, 32  }
  0x59   : > { %616 = vsyncadd (%p895_p3), %s188_s15, 4294967264  ;;  %v649_v0 = vmov 0.0   ;;  %v223_v1 = vld [vmem:[%s182_s6] sm:$0x3]  ;;  %v410_v2 = vld [vmem:[%s182_s6 + $0x2] sm:$0x3] }
  0x5a   : > { %221 = vst [vmem:[#allocation2] sm:$0x3] %v649_v0  ;;  %v227_v3 = vand.u32 2147483647, %v223_v1  ;;  %v244_v4 = vand.u32 2147483647, %v410_v2 }
  0x5b   : > { %v222_v9 = vld [vmem:[%s191_s19] sm:$0x3]  ;;  %v234_v16 = vmax.f32 %v223_v1, 0.0  ;;  %v251_v18 = vmax.f32 %v410_v2, 0.0  ;;  %vm264_vm2 = vcmask 1041408   ;;  %s408_s21 = sshll.u32 %s814_s18, 3 }
  0x5c   : > { %v228_v5 = vsub.f32 0.0, %v227_v3  ;;  %v245_v6 = vsub.f32 0.0, %v244_v4  ;;  %vm224_vm0 = vcmp.eq.s32.totalorder %v222_v9, 1  ;;  %vm241_vm1 = vcmp.eq.s32.totalorder %v222_v9, 2  ;;  %s216_s26 = scalar_lea.vmem [#allocation8], %s408_s21  ;;  %s413_s27 = sshll.u32 %s635_s12, 7 }
  0x5d   : > { %v409_v14 = vsel %vm224_vm0, 1.0, %v649_v0  ;;  %v411_v15 = vsel %vm241_vm1, 1.0, %v649_v0  ;;  %s292_s30 = sshll.u32 %s216_s26, 4  ;;  %s833_s7 = scalar_lea.hbm %s884_s2, %s413_s27  ;;  %s835_s30 = int_to_ptr.vmem [resolvable:$true] %s292_s30 }
  0x5e   : > { %v229_v7 = vmul.f32 1.442695, %v228_v5  ;;  %v246_v8 = vmul.f32 1.442695, %v245_v6  ;;  %v235_v17 = vmul.f32 %v409_v14, %v223_v1  ;;  %v252_v19 = vmul.f32 %v411_v15, %v410_v2  ;;  %s279_s8 = scalar_lea.sflag [#allocation5], %s814_s18  ;;  %s557_s16 = scalar_lea.vmem %s835_s30, 128 }
  0x5f   : > { %p558_p8 = scmp.ne.s32.totalorder %s835_s30, %s557_s16  ;;  %p896_p0 = scmp.ne.s32.totalorder %s889_s22, 0 }
  0x60   : > { %489 = vpow2.f32 %v229_v7  ;;  %v236_v20 = vsub.f32 %v234_v16, %v235_v17  ;;  %v253_v22 = vsub.f32 %v251_v18, %v252_v19  ;;  %s650_s12 = smov [#allocation8]  }
  0x61   : > { %491 = vpow2.f32 %v246_v8  ;;  %v257_v30 = vld [vmem:[#allocation2] sm:$0x3]  ;;  %p559_p11 = pnand %p558_p8, %p896_p0  ;;  %s561_s20 = sshll.u32 %s650_s12, 4  ;;  %s562_s20 = int_to_ptr.vmem [resolvable:$false] %s561_s20 }
  0x62   : > { %s563_s4 = scalar_lea.vmem %s562_s20, 256  ;;  %p564_p7 = scmp.lt.s32.totalorder %s835_s30, %s562_s20 }
  0x63   : > { %p560_p4 = pneg %p559_p11  ;;  %p565_p10 = scmp.lt.s32.totalorder %s563_s4, %s557_s16 }
  0x65   : > { %p566_p12 = por %p565_p10, %p564_p7 }
  0x67   : > { %p567_p9 = pnand %p566_p12, %p560_p4 }
  0x6a   : > { %v490_v10 = vpop.eup %489 }
  0x6b   : > { %v492_v11 = vpop.eup %491  ;;  %v231_v12 = vadd.f32 1.0, %v490_v10 }
  0x6c   : > { %v248_v13 = vadd.f32 1.0, %v492_v11 }
  0x6d   : > { %493 = vlog2.f32 %v231_v12 }
  0x6e   : > { %495 = vlog2.f32 %v248_v13 }
  0x77   : > { %v494_v21 = vpop.eup %493 }
  0x78   : > { %v496_v23 = vpop.eup %495  ;;  %v233_v24 = vmul.f32 0.6931472, %v494_v21 }
  0x79   : > { %v250_v25 = vmul.f32 0.6931472, %v496_v23 }
  0x7a   : > { %v237_v26 = vadd.f32 %v236_v20, %v233_v24 }
  0x7b   : > { %v254_v27 = vadd.f32 %v253_v22, %v250_v25 }
  0x7c   : > { %v238_v28 = vmin.f32 %v237_v26, 100.0 }
  0x7d   : > { %v255_v29 = vmin.f32 %v254_v27, 100.0 }
  0x7f   : > { %v256_v31 = vadd.f32 %v255_v29, %v238_v28 }
  0x81   : > { %v258_v32 = vadd.f32 %v257_v30, %v256_v31 }
  0x83   : > { %259 = vst [vmem:[#allocation2] sm:$0x3] %v258_v32 }
  0x8a   : > { %v263_v33 = vld [vmem:[#allocation2] sm:$0x3] }
  0x8b   : > { %v265_v34 = vsel %vm264_vm2, %v263_v33, 0.0 }
  0x8c   : > { %266 = vadd.xlane.f32.xlu0 %v265_v34 }
 0x119   : > { %v267_v35 = vpop.xlane.xlu0 %266 }
 0x11a   : > { %v268_v36 = vrot.slane %v267_v35, 4 }
 0x11c   : > { %v269_v37 = vadd.f32 %v268_v36, %v267_v35 }
 0x11e   : > { %v270_v38 = vrot.slane %v269_v37, 2 }
 0x120   : > { %v271_v39 = vadd.f32 %v270_v38, %v269_v37 }
 0x122   : > { %v272_v40 = vrot.slane %v271_v39, 1 }
 0x124   : > { %v273_v41 = vadd.f32 %v272_v40, %v271_v39 }
 0x126   : > { %417 = vpush %v273_v41 }
 0x157   : > { %s418_s28 = spop %417 }
 0x158   : > { %s275_s29 = smul.f32 0.001953125, %s418_s28 }
 0x15a   : > { %v276_v42 = vstv %s275_s29 }
 0x15b   : > { %277 = vst [vmem:[%s216_s26] sm:$0xff] %v276_v42 }
 0x15c   : > { %570 = shalt.err (!%p567_p9)
}
 0x15d   : > { %s571_s18 = scalar_lea.hbm %s833_s7, 128  ;;  %s575_s15 = scalar_lea.hbm %s884_s2, 256 }
 0x15e   : > { %p572_p1 = scmp.ne.s32.totalorder %s833_s7, %s571_s18  ;;  %p576_p5 = scmp.lt.u32.totalorder %s833_s7, %s884_s2 }
 0x15f   : > { %p577_p13 = scmp.lt.u32.totalorder %s575_s15, %s571_s18  ;;  %p579_p8 = scmp.lt.u32.totalorder %s571_s18, %s833_s7 }
 0x160   : > { %p573_p6 = pnand %p572_p1, %p896_p0 }
 0x161   : > { %p578_p3 = por %p577_p13, %p576_p5 }
 0x162   : > { %p574_p2 = pneg %p573_p6 }
 0x163   : > { %p580_p11 = por %p579_p8, %p578_p3 }
 0x165   : > { %p581_p4 = pnand %p580_p11, %p574_p2 }
 0x167   : > { %584 = shalt.err (!%p581_p4)
}
 0x168   : > { %423 = dma.vmem_to_hbm [thread:$0]  (%p896_p0), %s835_s30, 128, %s833_s7, %s279_s8  }
 0x169 PF: > { %s304_s26 = sand.u32 1, %s623_s9   ;;  %p897_p7 = scmp.ne.s32.totalorder %s890_s24, 0 }
 0x16a   : > { %p898_p10 = scmp.ge.s32.totalorder %s643_s14, 2  ;;  %s305_s27 = scalar_lea.sflag [#allocation5], %s304_s26 }
 0x16c   : > { %p433_p12 = pnand %p898_p10, %p897_p7 }
 0x16e   : > { %618 = dma.done.wait (!%p433_p12), %s305_s27, 128  }
 0x16f   : > { %620 = vsyncadd (!%p433_p12), %s305_s27, 4294967168  ;;  %s21_s14 = sadd.s32 1, %s643_s14   ;;  %s899_s9 = smov %s627_s10 }
 0x170   : > { %p18_p9 = scmp.ge.s32.totalorder %s21_s14, 4   ;;  %s900_s10 = smov %s631_s11 }
 0x171   : > { %s901_s11 = smov %s722_s23  ;;  %s902_s12 = smov %s639_s13 }
 0x172   : > { %s903_s13 = smov %s905_s17  ;;  %20 = sbr.rel (!%p18_p9) target bundleno = 8 (0x8), region = 95 }
 0x179   :  { %310 = vsyncpa [#allocation4], 1 }
 0x17a   :  { %312 = vsyncpa [#allocation4 + $0x1], 1 }
 0x17b   :  { %313 = vsyncpa [#allocation7], 1 }
 0x17c   :  { %315 = vsyncpa [#allocation7 + $0x1], 1 }
 0x17d   :  { %316 = vsyncpa [#allocation5], 1 }
 0x17e   :  { %318 = vsyncpa [#allocation5 + $0x1], 1 }

</bundles_post_ra>
